<compile_context>
chip_gen: v5e
topology: v5e:2x2
jax: 0.10.0
libtpu: 0.0.40
codegen_flags: <defaults>
</compile_context>

<pallas_src>
import functools

import jax
import jax.numpy as jnp
from jax.experimental import pallas as pl
from jax.experimental.pallas import tpu as pltpu


def _round_up(x, m):
    return ((x + m - 1) // m) * m


def pnet_kernel(idx_ref, w1_ref, w2_ref, b2_ref, w3_ref, b3_ref, o_ref, *, in_pad):
    """One batch tile: one-hot -> 3 MXU matmuls -> Swish x2 -> softmax."""
    tb = o_ref.shape[0]                                   # rows in this tile (static)

    # ---- Layer 1: in-register one-hot + single MXU matmul (b1 folded into W1) ----
    idx = idx_ref[...]                                    # (tb, 1) int32
    lane = jax.lax.broadcasted_iota(jnp.int32, (tb, in_pad), 1)
    onehot = (lane == idx).astype(jnp.float32)            # (tb, in_pad)
    h = jnp.dot(onehot, w1_ref[...], preferred_element_type=jnp.float32)
    h = h * jax.nn.sigmoid(h)                             # Swish (EUP logistic)

    # ---- Layer 2 ----
    h = jnp.dot(h, w2_ref[...], preferred_element_type=jnp.float32) + b2_ref[...]
    h = h * jax.nn.sigmoid(h)

    # ---- Layer 3 + softmax (padded lanes carry -1e30 via b3, so no in-kernel mask) ----
    logits = jnp.dot(h, w3_ref[...], preferred_element_type=jnp.float32) + b3_ref[...]
    m = jnp.max(logits, axis=-1, keepdims=True)
    e = jnp.exp(logits - m)
    denom = jnp.sum(e, axis=-1, keepdims=True)
    o_ref[...] = e / denom                                # exact divide: rows sum to 1


def pnet_forward(x, params, *, block_batch=None):
    """x: int32 [B] observation indices. Returns float32 [B, out_features]."""
    w1, b1, w2, b2, w3, b3 = params            # w*: [in, out] (pre-transposed), b*: [1, out]
    in_features, hid = w1.shape
    out_features = w3.shape[1]
    B = x.shape[0]

    in_pad = _round_up(in_features, 128)       # lane-dense one-hot width
    hid_p = _round_up(hid, 128)                # lane-dense hidden dim
    out_p = _round_up(out_features, 128)       # lane-dense output dim

    # Batch tiling: minimize padding (<~ n_tiles*8 rows) and, for B >= 64, use at
    # least 2 parallel tiles so both v7x TensorCores get work.
    if block_batch is not None:
        tb = _round_up(block_batch, 8)
    else:
        max_tile = 512
        n_tiles = max(pl.cdiv(B, max_tile), 2 if B >= 64 else 1)
        tb = _round_up(pl.cdiv(B, n_tiles), 8)
    b_pad = _round_up(B, tb)
    grid = (b_pad // tb,)

    def pad2(a, rows, cols, fill=0.0):
        return jnp.full((rows, cols), fill, a.dtype).at[:a.shape[0], :a.shape[1]].set(a)

    # Zero padding keeps the math exact: padded hidden lanes stay 0 through Swish and
    # padded W2/W3 rows/cols contribute nothing.  b1 is folded into W1 (exact, since
    # layer 1 is a pure row lookup); padded b3 lanes are -1e30 so padded logits vanish
    # in the softmax with no in-kernel masking.
    w1p = pad2(w1 + b1, in_pad, hid_p)                     # b1 folded into each row
    w2p = pad2(w2, hid_p, hid_p)
    b2p = pad2(b2, 1, hid_p)
    w3p = pad2(w3, hid_p, out_p)
    b3p = pad2(b3, 1, out_p, fill=-1e30)

    # Indices as a (b_pad, 1) int32 column; padded rows reuse index 0 (sliced off).
    idx = jnp.zeros((b_pad, 1), jnp.int32).at[:B, 0].set(x.astype(jnp.int32))

    # Whole-array VMEM-resident weights/biases (fetched once, not per grid step).
    resident = pl.BlockSpec(memory_space=pltpu.MemorySpace.VMEM)

    kernel = functools.partial(pnet_kernel, in_pad=in_pad)

    out = pl.pallas_call(
        kernel,
        out_shape=jax.ShapeDtypeStruct((b_pad, out_p), jnp.float32),
        grid_spec=pltpu.PrefetchScalarGridSpec(
            num_scalar_prefetch=0,
            grid=grid,
            in_specs=[
                pl.BlockSpec((tb, 1), lambda i: (i, 0)),   # per-tile indices (VMEM)
                resident,                                   # w1 (+ folded b1)
                resident,                                   # w2
                resident,                                   # b2
                resident,                                   # w3
                resident,                                   # b3 (padded lanes = -1e30)
            ],
            out_specs=pl.BlockSpec((tb, out_p), lambda i: (i, 0)),
        ),
        compiler_params=pltpu.CompilerParams(
            dimension_semantics=("parallel",),  # batch tiles shard across v7x's 2 TCs
        ),
    )(idx, w1p, w2p, b2p, w3p, b3p)

    return out[:B, :out_features]


def init_params(key, in_features, hid_num, out_features):
    """Kaiming-normal weights (fan_in, gain=sqrt(2)), zero biases, like PyTorch init.
    Weights are stored pre-transposed as [in, out]."""
    k1, k2, k3 = jax.random.split(key, 3)

    def kaiming(k, fan_in, fan_out):
        std = (2.0 / fan_in) ** 0.5
        w = std * jax.random.normal(k, (fan_out, fan_in), dtype=jnp.float32)
        return w.T

    w1 = kaiming(k1, in_features, hid_num)
    b1 = jnp.zeros((1, hid_num), jnp.float32)
    w2 = kaiming(k2, hid_num, hid_num)
    b2 = jnp.zeros((1, hid_num), jnp.float32)
    w3 = kaiming(k3, hid_num, out_features)
    b3 = jnp.zeros((1, out_features), jnp.float32)
    return (w1, b1, w2, b2, w3, b3)


if __name__ == "__main__":
    # Module-consistent small sizes: observation_space.n=16, hid_num=32, action_space.n=4
    IN_FEATURES = 16
    HID = 32
    OUT_FEATURES = 4
    BATCH = 8

    key = jax.random.PRNGKey(0)
    k_params, k_x = jax.random.split(key)
    params = init_params(k_params, IN_FEATURES, HID, OUT_FEATURES)
    x = jax.random.randint(k_x, (BATCH,), 0, IN_FEATURES, dtype=jnp.int32)

    out = pnet_forward(x, params)
    out = jax.block_until_ready(out)

    # Reference check in plain JAX (one-hot path, exact divide).
    w1, b1, w2, b2, w3, b3 = params
    oh = jax.nn.one_hot(x, IN_FEATURES, dtype=jnp.float32)
    h = oh @ w1 + b1
    h = h * jax.nn.sigmoid(h)
    h = h @ w2 + b2
    h = h * jax.nn.sigmoid(h)
    ref = jax.nn.softmax(h @ w3 + b3, axis=-1)

    assert out.shape == (BATCH, OUT_FEATURES)
    assert jnp.allclose(out, ref, atol=1e-5, rtol=1e-5)
    assert jnp.allclose(jnp.sum(out, axis=-1), 1.0, atol=1e-5)
    print("KERNEL_OK")
</pallas_src>

<mosaic_0001>
module attributes {stable_mosaic.version = 11 : i64} {
  func.func @pnet_kernel(%arg0: i32, %arg1: memref<8x1xi32, #tpu.memory_space<vmem>>, %arg2: memref<128x128xf32, #tpu.memory_space<vmem>>, %arg3: memref<128x128xf32, #tpu.memory_space<vmem>>, %arg4: memref<1x128xf32, #tpu.memory_space<vmem>>, %arg5: memref<128x128xf32, #tpu.memory_space<vmem>>, %arg6: memref<1x128xf32, #tpu.memory_space<vmem>>, %arg7: memref<8x128xf32, #tpu.memory_space<vmem>>) attributes {dimension_semantics = [#tpu.dimension_semantics<parallel>], iteration_bounds = array<i64: 1>, scalar_prefetch = 0 : i64, scratch_operands = 0 : i64, tpu.core_type = #tpu.core_type<tc>, window_params = [{transform_indices = @transform_0, window_bounds = array<i64: 8, 1>}, {pipeline_mode = #tpu.pipeline_mode<synchronous>, transform_indices = @transform_1, window_bounds = array<i64: 128, 128>}, {pipeline_mode = #tpu.pipeline_mode<synchronous>, transform_indices = @transform_2, window_bounds = array<i64: 128, 128>}, {pipeline_mode = #tpu.pipeline_mode<synchronous>, transform_indices = @transform_3, window_bounds = array<i64: 1, 128>}, {pipeline_mode = #tpu.pipeline_mode<synchronous>, transform_indices = @transform_4, window_bounds = array<i64: 128, 128>}, {pipeline_mode = #tpu.pipeline_mode<synchronous>, transform_indices = @transform_5, window_bounds = array<i64: 1, 128>}, {transform_indices = @transform_6, window_bounds = array<i64: 8, 128>}]} {
    %c0 = arith.constant 0 : index
    %c0_0 = arith.constant 0 : index
    %0 = vector.load %arg1[%c0, %c0_0] : memref<8x1xi32, #tpu.memory_space<vmem>>, vector<8x1xi32>
    %1 = tpu.iota {dimensions = array<i32: 1>} : vector<8x128xi32>
    %2 = vector.broadcast %0 : vector<8x1xi32> to vector<8x128xi32>
    %3 = arith.cmpi eq, %1, %2 : vector<8x128xi32>
    %4 = arith.extui %3 : vector<8x128xi1> to vector<8x128xi32>
    %5 = arith.sitofp %4 : vector<8x128xi32> to vector<8x128xf32>
    %c0_1 = arith.constant 0 : index
    %c0_2 = arith.constant 0 : index
    %6 = vector.load %arg2[%c0_1, %c0_2] : memref<128x128xf32, #tpu.memory_space<vmem>>, vector<128x128xf32>
    %cst = arith.constant dense<0.000000e+00> : vector<8x128xf32>
    %7 = tpu.matmul %5, %6, %cst {dimension_numbers = #tpu.dot_dimension_numbers<[1], [0], [0], [1], [0, 0, 1, 1], [], []>} : vector<8x128xf32>, vector<128x128xf32>, vector<8x128xf32> -> vector<8x128xf32>
    %8 = arith.negf %7 : vector<8x128xf32>
    %9 = math.exp %8 : vector<8x128xf32>
    %cst_3 = arith.constant 1.000000e+00 : f32
    %10 = vector.broadcast %cst_3 : f32 to vector<8x128xf32>
    %11 = arith.addf %10, %9 : vector<8x128xf32>
    %12 = arith.divf %10, %11 : vector<8x128xf32>
    %13 = arith.mulf %7, %12 : vector<8x128xf32>
    %c0_4 = arith.constant 0 : index
    %c0_5 = arith.constant 0 : index
    %14 = vector.load %arg3[%c0_4, %c0_5] : memref<128x128xf32, #tpu.memory_space<vmem>>, vector<128x128xf32>
    %cst_6 = arith.constant dense<0.000000e+00> : vector<8x128xf32>
    %15 = tpu.matmul %13, %14, %cst_6 {dimension_numbers = #tpu.dot_dimension_numbers<[1], [0], [0], [1], [0, 0, 1, 1], [], []>} : vector<8x128xf32>, vector<128x128xf32>, vector<8x128xf32> -> vector<8x128xf32>
    %c0_7 = arith.constant 0 : index
    %c0_8 = arith.constant 0 : index
    %16 = vector.load %arg4[%c0_7, %c0_8] : memref<1x128xf32, #tpu.memory_space<vmem>>, vector<1x128xf32>
    %17 = vector.broadcast %16 : vector<1x128xf32> to vector<8x128xf32>
    %18 = arith.addf %15, %17 : vector<8x128xf32>
    %19 = arith.negf %18 : vector<8x128xf32>
    %20 = math.exp %19 : vector<8x128xf32>
    %cst_9 = arith.constant 1.000000e+00 : f32
    %21 = vector.broadcast %cst_9 : f32 to vector<8x128xf32>
    %22 = arith.addf %21, %20 : vector<8x128xf32>
    %23 = arith.divf %21, %22 : vector<8x128xf32>
    %24 = arith.mulf %18, %23 : vector<8x128xf32>
    %c0_10 = arith.constant 0 : index
    %c0_11 = arith.constant 0 : index
    %25 = vector.load %arg5[%c0_10, %c0_11] : memref<128x128xf32, #tpu.memory_space<vmem>>, vector<128x128xf32>
    %cst_12 = arith.constant dense<0.000000e+00> : vector<8x128xf32>
    %26 = tpu.matmul %24, %25, %cst_12 {dimension_numbers = #tpu.dot_dimension_numbers<[1], [0], [0], [1], [0, 0, 1, 1], [], []>} : vector<8x128xf32>, vector<128x128xf32>, vector<8x128xf32> -> vector<8x128xf32>
    %c0_13 = arith.constant 0 : index
    %c0_14 = arith.constant 0 : index
    %27 = vector.load %arg6[%c0_13, %c0_14] : memref<1x128xf32, #tpu.memory_space<vmem>>, vector<1x128xf32>
    %28 = vector.broadcast %27 : vector<1x128xf32> to vector<8x128xf32>
    %29 = arith.addf %26, %28 : vector<8x128xf32>
    %cst_15 = arith.constant dense<0xFF800000> : vector<8xf32>
    %30 = vector.multi_reduction <maximumf>, %29, %cst_15 [1] : vector<8x128xf32> to vector<8xf32>
    %31 = vector.shape_cast %30 : vector<8xf32> to vector<8x1xf32>
    %32 = vector.broadcast %31 : vector<8x1xf32> to vector<8x128xf32>
    %33 = arith.subf %29, %32 : vector<8x128xf32>
    %34 = math.exp %33 : vector<8x128xf32>
    %cst_16 = arith.constant dense<0.000000e+00> : vector<8xf32>
    %35 = vector.multi_reduction <add>, %34, %cst_16 [1] : vector<8x128xf32> to vector<8xf32>
    %36 = vector.shape_cast %35 : vector<8xf32> to vector<8x1xf32>
    %37 = vector.broadcast %36 : vector<8x1xf32> to vector<8x128xf32>
    %38 = arith.divf %34, %37 : vector<8x128xf32>
    %c0_17 = arith.constant 0 : index
    %c0_18 = arith.constant 0 : index
    %39 = vector.load %arg7[%c0_17, %c0_18] : memref<8x128xf32, #tpu.memory_space<vmem>>, vector<8x128xf32>
    tpu.vector_store %arg7[%c0_17, %c0_18], %38 {strides = array<i32>} : memref<8x128xf32, #tpu.memory_space<vmem>>, vector<8x128xf32>,
    return
  }
  func.func @transform_0(%arg0: i32) -> (i32, i32) {
    %c0_i32 = arith.constant 0 : i32
    %c0_i32_0 = arith.constant 0 : i32
    return %arg0, %c0_i32 : i32, i32
  }
  func.func @transform_1(%arg0: i32) -> (i32, i32) {
    %c0_i32 = arith.constant 0 : i32
    %c0_i32_0 = arith.constant 0 : i32
    %c0_i32_1 = arith.constant 0 : i32
    return %c0_i32, %c0_i32_0 : i32, i32
  }
  func.func @transform_2(%arg0: i32) -> (i32, i32) {
    %c0_i32 = arith.constant 0 : i32
    %c0_i32_0 = arith.constant 0 : i32
    %c0_i32_1 = arith.constant 0 : i32
    return %c0_i32, %c0_i32_0 : i32, i32
  }
  func.func @transform_3(%arg0: i32) -> (i32, i32) {
    %c0_i32 = arith.constant 0 : i32
    %c0_i32_0 = arith.constant 0 : i32
    %c0_i32_1 = arith.constant 0 : i32
    return %c0_i32, %c0_i32_0 : i32, i32
  }
  func.func @transform_4(%arg0: i32) -> (i32, i32) {
    %c0_i32 = arith.constant 0 : i32
    %c0_i32_0 = arith.constant 0 : i32
    %c0_i32_1 = arith.constant 0 : i32
    return %c0_i32, %c0_i32_0 : i32, i32
  }
  func.func @transform_5(%arg0: i32) -> (i32, i32) {
    %c0_i32 = arith.constant 0 : i32
    %c0_i32_0 = arith.constant 0 : i32
    %c0_i32_1 = arith.constant 0 : i32
    return %c0_i32, %c0_i32_0 : i32, i32
  }
  func.func @transform_6(%arg0: i32) -> (i32, i32) {
    %c0_i32 = arith.constant 0 : i32
    %c0_i32_0 = arith.constant 0 : i32
    return %arg0, %c0_i32 : i32, i32
  }
}

</mosaic_0001>

<bundles_post_ra>
// kernel: tpu_custom_call.1
= control target key start
LH: loop header
LB: loop body
LE: loop exit
PB: predicated region body
PF: predicated region fallthrough
CT: control target
= control target key end

     0   :  { %11 = vsyncpa [#allocation3], 0  ;;  %s470_s0 = inlined_call_operand.vmem [shape: s32[8,1], index: 0, kind: input, shape index: {}]   ;;  %s471_s1 = inlined_call_operand.hbm [shape: f32[128,128], index: 1, kind: input, shape index: {}]   ;;  %s472_s2 = inlined_call_operand.hbm [shape: f32[128,128], index: 2, kind: input, shape index: {}]   ;;  %s473_s3 = inlined_call_operand.vmem [shape: f32[1,128], index: 3, kind: input, shape index: {}]   ;;  %s474_s4 = inlined_call_operand.hbm [shape: f32[128,128], index: 4, kind: input, shape index: {}]   ;;  %s475_s5 = inlined_call_operand.vmem [shape: f32[1,128], index: 5, kind: input, shape index: {}]   ;;  %s476_s6 = inlined_call_operand.hbm [shape: f32[8,128], index: 6, kind: output, shape index: {}]  }
   0x1   :  { %12 = vsyncpa [#allocation6], 0 }
   0x2   :  { %13 = vsyncpa [#allocation4], 0  ;;  %s33_s23 = sshll.u32 %s472_s2, 4  ;;  %s406_s24 = smov [#allocation5]   ;;  %s34_s23 = int_to_ptr.hbm [resolvable:$true] %s33_s23 }
   0x3   :  { %s35_s25 = sshll.u32 %s406_s24, 4  ;;  %s20_s28 = sshll.u32 %s471_s1, 4  ;;  %s36_s25 = int_to_ptr.vmem [resolvable:$true] %s35_s25  ;;  %s21_s28 = int_to_ptr.hbm [resolvable:$true] %s20_s28 }
   0x4   :  { %s407_s29 = smov 128   ;;  %s408_s30 = smov 8  }
   0x5   :  { %41 = dma.hbm_to_vmem [thread:$0]  %s34_s23, 2048, %s36_s25, [#allocation6], %s407_s29, %s407_s29, %s408_s30  }
   0x6   :  { %s409_s7 = smov [#allocation2]   ;;  %s48_s11 = sshll.u32 %s474_s4, 4  ;;  %s49_s11 = int_to_ptr.hbm [resolvable:$true] %s48_s11 }
   0x7   :  { %s22_s8 = sshll.u32 %s409_s7, 4  ;;  %s410_s2 = smov [#allocation7]   ;;  %s23_s8 = int_to_ptr.vmem [resolvable:$true] %s22_s8 }
   0x8   :  { %28 = dma.hbm_to_vmem [thread:$0]  %s21_s28, 2048, %s23_s8, [#allocation3], %s407_s29, %s407_s29, %s408_s30  }
   0x9   :  { %s50_s12 = sshll.u32 %s410_s2, 4  ;;  %s51_s12 = int_to_ptr.vmem [resolvable:$true] %s50_s12 }
   0xa   :  { %56 = dma.hbm_to_vmem [thread:$0]  %s49_s11, 2048, %s51_s12, [#allocation6], %s407_s29, %s407_s29, %s408_s30  }
   0xb   :  { %400 = dma.done.wait [#allocation3], 2048  }
   0xc   :  { %401 = vsyncadd [#allocation3], 4294965248 }
   0xd   :  { %402 = dma.done.wait [#allocation6], 4096  }
   0xe   :  { %403 = vsyncadd [#allocation6], 4294963200  ;;  %v411_v0 = vmov 0   ;;  %v71_v1 = vld [vmem:[%s470_s0] sm:$0xff]  ;;  %v95_v2 = vld [vmem:[#allocation2 + $0x78] sm:$0xff]  ;;  %v72_v18 = vlaneseq  ;;  %v412_v21 = vmov 1.0  }
   0xf   :  { %289 = vset.pattern.permute.xlu0 %v411_v0  ;;  %v94_v3 = vld [vmem:[#allocation2 + $0x70] sm:$0xff]  ;;  %96 = vmatpush.msra.mxu0 %v95_v2  ;;  %v93_v4 = vld [vmem:[#allocation2 + $0x68] sm:$0xff]  ;;  %v92_v5 = vld [vmem:[#allocation2 + $0x60] sm:$0xff]  ;;  %s266_s18 = sshll.u32 %s476_s6, 4  ;;  %s267_s18 = int_to_ptr.hbm [resolvable:$true] %s266_s18 }
  0x10   :  { %75 = vperm.xlu0 %289, %v71_v1   ;;  %v91_v6 = vld [vmem:[#allocation2 + $0x58] sm:$0xff]  ;;  %v90_v7 = vld [vmem:[#allocation2 + $0x50] sm:$0xff]  ;;  %v89_v8 = vld [vmem:[#allocation2 + $0x48] sm:$0xff]  ;;  %v73_v19 = vand.u32 127, %v72_v18 }
  0x11   :  { %97 = vmatpush.msra.mxu0 %v94_v3  ;;  %v88_v9 = vld [vmem:[#allocation2 + $0x40] sm:$0xff]  ;;  %v87_v10 = vld [vmem:[#allocation2 + $0x38] sm:$0xff]  ;;  %v86_v11 = vld [vmem:[#allocation2 + $0x30] sm:$0xff] }
  0x12   :  { %v85_v12 = vld [vmem:[#allocation2 + $0x28] sm:$0xff]  ;;  %v84_v13 = vld [vmem:[#allocation2 + $0x20] sm:$0xff]  ;;  %v83_v14 = vld [vmem:[#allocation2 + $0x18] sm:$0xff] }
  0x13   :  { %98 = vmatpush.msra.mxu0 %v93_v4  ;;  %v82_v15 = vld [vmem:[#allocation2 + $0x10] sm:$0xff]  ;;  %v81_v16 = vld [vmem:[#allocation2 + $0x8] sm:$0xff]  ;;  %v80_v17 = vld [vmem:[#allocation2] sm:$0xff] }
  0x14   :  { %v151_v22 = vld [vmem:[#allocation5 + $0x78] sm:$0xff]  ;;  %v150_v23 = vld [vmem:[#allocation5 + $0x70] sm:$0xff]  ;;  %v149_v24 = vld [vmem:[#allocation5 + $0x68] sm:$0xff] }
  0x15   :  { %99 = vmatpush.msra.mxu0 %v92_v5  ;;  %156 = vmatpush.msra.mxu1 %v151_v22  ;;  %v148_v25 = vld [vmem:[#allocation5 + $0x60] sm:$0xff]  ;;  %v147_v26 = vld [vmem:[#allocation5 + $0x58] sm:$0xff]  ;;  %v146_v27 = vld [vmem:[#allocation5 + $0x50] sm:$0xff] }
  0x16   :  { %v145_v28 = vld [vmem:[#allocation5 + $0x48] sm:$0xff]  ;;  %v144_v29 = vld [vmem:[#allocation5 + $0x40] sm:$0xff]  ;;  %v143_v30 = vld [vmem:[#allocation5 + $0x38] sm:$0xff] }
  0x17   :  { %100 = vmatpush.msra.mxu0 %v91_v6  ;;  %157 = vmatpush.msra.mxu1 %v150_v23  ;;  %v142_v31 = vld [vmem:[#allocation5 + $0x30] sm:$0xff]  ;;  %v141_v32 = vld [vmem:[#allocation5 + $0x28] sm:$0xff]  ;;  %v140_v33 = vld [vmem:[#allocation5 + $0x20] sm:$0xff] }
  0x18   :  { %v139_v34 = vld [vmem:[#allocation5 + $0x18] sm:$0xff]  ;;  %v138_v35 = vld [vmem:[#allocation5 + $0x10] sm:$0xff]  ;;  %v137_v36 = vld [vmem:[#allocation5 + $0x8] sm:$0xff] }
  0x19   :  { %101 = vmatpush.msra.mxu0 %v90_v7  ;;  %158 = vmatpush.msra.mxu1 %v149_v24  ;;  %v136_v37 = vld [vmem:[#allocation5] sm:$0xff]  ;;  %v211_v53 = vld [vmem:[#allocation7 + $0x78] sm:$0xff]  ;;  %v210_v54 = vld [vmem:[#allocation7 + $0x70] sm:$0xff] }
  0x1a   :  { %216 = vmatpush.msra.mxu2 %v211_v53  ;;  %v209_v55 = vld [vmem:[#allocation7 + $0x68] sm:$0xff]  ;;  %v208_v56 = vld [vmem:[#allocation7 + $0x60] sm:$0xff]  ;;  %v207_v57 = vld [vmem:[#allocation7 + $0x58] sm:$0xff] }
  0x1b   :  { %102 = vmatpush.msra.mxu0 %v89_v8  ;;  %159 = vmatpush.msra.mxu1 %v148_v25  ;;  %v206_v58 = vld [vmem:[#allocation7 + $0x50] sm:$0xff]  ;;  %v205_v59 = vld [vmem:[#allocation7 + $0x48] sm:$0xff]  ;;  %v204_v60 = vld [vmem:[#allocation7 + $0x40] sm:$0xff] }
  0x1c   :  { %217 = vmatpush.msra.mxu2 %v210_v54  ;;  %v203_v61 = vld [vmem:[#allocation7 + $0x38] sm:$0xff]  ;;  %v202_v62 = vld [vmem:[#allocation7 + $0x30] sm:$0xff]  ;;  %v201_v63 = vld [vmem:[#allocation7 + $0x28] sm:$0xff] }
  0x1d   :  { %103 = vmatpush.msra.mxu0 %v88_v9  ;;  %160 = vmatpush.msra.mxu1 %v147_v26  ;;  %v200_v0 = vld [vmem:[#allocation7 + $0x20] sm:$0xff]  ;;  %v199_v1 = vld [vmem:[#allocation7 + $0x18] sm:$0xff]  ;;  %v198_v2 = vld [vmem:[#allocation7 + $0x10] sm:$0xff] }
  0x1e   :  { %218 = vmatpush.msra.mxu2 %v209_v55  ;;  %v197_v3 = vld [vmem:[#allocation7 + $0x8] sm:$0xff]  ;;  %v290_v4 = vld [vmem:[%s473_s3] ss:$0 sm:$0xff] }
  0x1f   :  { %104 = vmatpush.msra.mxu0 %v87_v10  ;;  %161 = vmatpush.msra.mxu1 %v146_v27  ;;  %v196_v5 = vld [vmem:[#allocation7] sm:$0xff] }
  0x20   :  { %219 = vmatpush.msra.mxu2 %v208_v56  ;;  %v291_v22 = vld [vmem:[%s475_s5] ss:$0 sm:$0xff]  ;;  %s413_s5 = smov [#allocation8]  }
  0x21   :  { %105 = vmatpush.msra.mxu0 %v86_v11  ;;  %162 = vmatpush.msra.mxu1 %v145_v28  ;;  %s264_s15 = sshll.u32 %s413_s5, 4  ;;  %s265_s15 = int_to_ptr.vmem [resolvable:$true] %s264_s15 }
  0x22   :  { %220 = vmatpush.msra.mxu2 %v207_v57 }
  0x23   :  { %106 = vmatpush.msra.mxu0 %v85_v12  ;;  %163 = vmatpush.msra.mxu1 %v144_v29 }
  0x24   :  { %221 = vmatpush.msra.mxu2 %v206_v58 }
  0x25   :  { %107 = vmatpush.msra.mxu0 %v84_v13  ;;  %164 = vmatpush.msra.mxu1 %v143_v30 }
  0x26   :  { %222 = vmatpush.msra.mxu2 %v205_v59 }
  0x27   :  { %108 = vmatpush.msra.mxu0 %v83_v14  ;;  %165 = vmatpush.msra.mxu1 %v142_v31 }
  0x28   :  { %223 = vmatpush.msra.mxu2 %v204_v60 }
  0x29   :  { %109 = vmatpush.msra.mxu0 %v82_v15  ;;  %166 = vmatpush.msra.mxu1 %v141_v32 }
  0x2a   :  { %224 = vmatpush.msra.mxu2 %v203_v61 }
  0x2b   :  { %110 = vmatpush.msra.mxu0 %v81_v16  ;;  %167 = vmatpush.msra.mxu1 %v140_v33 }
  0x2c   :  { %225 = vmatpush.msra.mxu2 %v202_v62 }
  0x2d   :  { %111 = vmatpush.msra.mxu0 %v80_v17  ;;  %168 = vmatpush.msra.mxu1 %v139_v34 }
  0x2e   :  { %226 = vmatpush.msra.mxu2 %v201_v63 }
  0x2f   :  { %169 = vmatpush.msra.mxu1 %v138_v35 }
  0x30   :  { %227 = vmatpush.msra.mxu2 %v200_v0 }
  0x31   :  { %170 = vmatpush.msra.mxu1 %v137_v36 }
  0x32   :  { %228 = vmatpush.msra.mxu2 %v199_v1 }
  0x33   :  { %171 = vmatpush.msra.mxu1 %v136_v37 }
  0x34   :  { %229 = vmatpush.msra.mxu2 %v198_v2 }
  0x36   :  { %230 = vmatpush.msra.mxu2 %v197_v3 }
  0x38   :  { %231 = vmatpush.msra.mxu2 %v196_v5 }
  0x82   :  { %v76_v20 = vpop.permute.xlu0 %75 }
  0x83   :  { %vm77_vm0 = vcmp.eq.s32.totalorder %v73_v19, %v76_v20 }
  0x84   :  { %278 = vmatmul.msk.f32.vlgmr.msra.gmra.mxu0 %vm77_vm0, %v412_v21 }
 0x101   :  { %v113_v38 = vpop.f32.mrf.mxu0 }
 0x102   :  { %v279_v39 = vmul.f32 -1.442695, %v113_v38 }
 0x104   :  { %292 = vpow2.f32 %v279_v39 }
 0x10a   :  { %v293_v40 = vpop.eup %292 }
 0x10b   :  { %v119_v41 = vadd.f32 1.0, %v293_v40 }
 0x10d   :  { %294 = vrcp.f32 %v119_v41  ;;  %v131_v45 = vand.u32 2147483648, %v119_v41  ;;  %v129_v47 = vand.u32 2147483647, %v119_v41  ;;  %vm125_vm2 = vweird.f32 %v119_v41 }
 0x10f   :  { %v132_v49 = vor.u32 1.1754944e-38, %v131_v45  ;;  %vm130_vm4 = vcmp.eq.f32.partialorder %v129_v47, 8.507059e+37 }
 0x113   :  { %v295_v42 = vpop.eup %294 }
 0x114   :  { %v121_v43 = vmul.f32 %v295_v42, %v119_v41  ;;  %vm126_vm1 = vweird.f32 %v295_v42 }
 0x115   :  { %vm127_vm3 = vmor %vm125_vm2, %vm126_vm1 }
 0x116   :  { %v122_v44 = vsub.f32 1.0, %v121_v43 }
 0x118   :  { %v123_v46 = vmul.f32 %v295_v42, %v122_v44 }
 0x11a   :  { %v124_v48 = vadd.f32 %v295_v42, %v123_v46 }
 0x11c   :  { %v128_v50 = vsel %vm127_vm3, %v295_v42, %v124_v48 }
 0x11d   :  { %v133_v51 = vsel %vm130_vm4, %v132_v49, %v128_v50 }
 0x11e   :  { %v135_v52 = vmul.f32 %v133_v51, %v113_v38 }
 0x120   :  { %172 = vmatmul.f32.vlgmr.msra.gmra.mxu1 %v135_v52 }
 0x19d   :  { %v173_v6 = vpop.f32.mrf.mxu1 }
 0x19e   :  { %v174_v7 = vadd.f32 %v290_v4, %v173_v6 }
 0x1a0   :  { %v280_v8 = vmul.f32 -1.442695, %v174_v7 }
 0x1a2   :  { %296 = vpow2.f32 %v280_v8 }
 0x1a8   :  { %v297_v9 = vpop.eup %296 }
 0x1a9   :  { %v179_v10 = vadd.f32 1.0, %v297_v9 }
 0x1ab   :  { %298 = vrcp.f32 %v179_v10  ;;  %v191_v14 = vand.u32 2147483648, %v179_v10  ;;  %v189_v16 = vand.u32 2147483647, %v179_v10  ;;  %vm185_vm6 = vweird.f32 %v179_v10 }
 0x1ad   :  { %v192_v18 = vor.u32 1.1754944e-38, %v191_v14  ;;  %vm190_vm8 = vcmp.eq.f32.partialorder %v189_v16, 8.507059e+37 }
 0x1b1   :  { %v299_v11 = vpop.eup %298 }
 0x1b2   :  { %v181_v12 = vmul.f32 %v299_v11, %v179_v10  ;;  %vm186_vm5 = vweird.f32 %v299_v11 }
 0x1b3   :  { %vm187_vm7 = vmor %vm185_vm6, %vm186_vm5 }
 0x1b4   :  { %v182_v13 = vsub.f32 1.0, %v181_v12 }
 0x1b6   :  { %v183_v15 = vmul.f32 %v299_v11, %v182_v13 }
 0x1b8   :  { %v184_v17 = vadd.f32 %v299_v11, %v183_v15 }
 0x1ba   :  { %v188_v19 = vsel %vm187_vm7, %v299_v11, %v184_v17 }
 0x1bb   :  { %v193_v20 = vsel %vm190_vm8, %v192_v18, %v188_v19 }
 0x1bc   :  { %v195_v21 = vmul.f32 %v193_v20, %v174_v7 }
 0x1be   :  { %232 = vmatmul.f32.vlgmr.msra.gmra.mxu2 %v195_v21 }
 0x241   :  { %v233_v23 = vpop.f32.mrf.mxu2 }
 0x242   :  { %v234_v24 = vadd.f32 %v291_v22, %v233_v23 }
 0x244   :  { %236 = vmax.xlane.f32.xlu0 %v234_v24 }
 0x2b7   :  { %v237_v25 = vpop.xlane.xlu0 %236 }
 0x2b8   :  { %v238_v26 = vsub.f32 %v234_v24, %v237_v25 }
 0x2ba   :  { %v239_v27 = vmul.f32 1.442695, %v238_v26 }
 0x2bc   :  { %300 = vpow2.f32 %v239_v27 }
 0x2c2   :  { %v301_v28 = vpop.eup %300 }
 0x2c3   :  { %241 = vadd.xlane.f32.xlu1 %v301_v28 }
 0x336   :  { %v242_v29 = vpop.xlane.xlu1 %241 }
 0x337   :  { %302 = vrcp.f32 %v242_v29  ;;  %v254_v33 = vand.u32 2147483648, %v242_v29  ;;  %v252_v35 = vand.u32 2147483647, %v242_v29  ;;  %vm248_vm10 = vweird.f32 %v242_v29 }
 0x339   :  { %v255_v37 = vor.u32 1.1754944e-38, %v254_v33  ;;  %vm253_vm12 = vcmp.eq.f32.partialorder %v252_v35, 8.507059e+37 }
 0x33d   :  { %v303_v30 = vpop.eup %302 }
 0x33e   :  { %v244_v31 = vmul.f32 %v303_v30, %v242_v29  ;;  %vm249_vm9 = vweird.f32 %v303_v30 }
 0x33f   :  { %vm250_vm11 = vmor %vm248_vm10, %vm249_vm9 }
 0x340   :  { %v245_v32 = vsub.f32 1.0, %v244_v31 }
 0x342   :  { %v246_v34 = vmul.f32 %v303_v30, %v245_v32 }
 0x344   :  { %v247_v36 = vadd.f32 %v303_v30, %v246_v34 }
 0x346   :  { %v251_v38 = vsel %vm250_vm11, %v303_v30, %v247_v36 }
 0x347   :  { %v256_v39 = vsel %vm253_vm12, %v255_v37, %v251_v38 }
 0x348   :  { %v257_v40 = vmul.f32 %v301_v28, %v256_v39 }
 0x34a   :  { %258 = vst [vmem:[#allocation8] sm:$0xff] %v257_v40 }
 0x34b   :  { %269 = dma.vmem_to_hbm [thread:$0]  %s265_s15, 128, %s267_s18, [#allocation4]  }
 0x34c   :  { %404 = dma.done.wait [#allocation4], 128  }
 0x34d   :  { %405 = vsyncadd [#allocation4], 4294967168 }
 0x34e   :  { %274 = vsyncpa [#allocation3], 1 }
 0x34f   :  { %275 = vsyncpa [#allocation6], 1 }
 0x350   :  { %276 = vsyncpa [#allocation4], 1 }

</bundles_post_ra>
